<compile_context>
chip_gen: v6e
topology: v6e:2x2x1
jax: 0.10.0
libtpu: 0.0.40
codegen_flags: <defaults>
</compile_context>

<pallas_src>
import functools

import jax
import jax.numpy as jnp
from jax.experimental import pallas as pl
from jax.experimental.pallas import tpu as pltpu  # noqa: F401  (TPU backend)


def _round_up(n, m):
    return ((n + m - 1) // m) * m


# ------------------------------- kernel --------------------------------------


def decoder_kernel(gx_ref, h0_ref, c0_ref, wh_ref, whead_ref, bhead_ref,
                   heads_ref, h_fin_ref, c_fin_ref, *, n_dist):
    """Fused LSTM recurrence + mixture/q heads.

    gx_ref:    (T, B, 4*Hp)  precomputed x @ W_ih + b (gate blocks lane-aligned)
    h0_ref:    (B, Hp)       initial hidden (padded lanes are zero)
    c0_ref:    (B, Hp)       initial cell   (padded lanes are zero)
    wh_ref:    (Hp, 4*Hp)    recurrent weight (padded rows/cols are zero)
    whead_ref: (Hp, HEADW)   [mixture | q_head] weights, zero padded to 128 lanes
    bhead_ref: (1, HEADW)    [mixture | q_head] bias, zero padded
    heads_ref: (T, B, HEADW) dense output slab (processed mix + log-softmax q)
    h_fin_ref: (B, Hp)       final hidden
    c_fin_ref: (B, Hp)       final cell
    """
    T = gx_ref.shape[0]
    B, hp = h0_ref.shape
    headw = whead_ref.shape[1]
    m = n_dist

    wh = wh_ref[...]
    whead = whead_ref[...]
    bhead = bhead_ref[...]

    # Lane-index masks for the head post-processing (hoisted out of the loop).
    col = jax.lax.broadcasted_iota(jnp.int32, (B, headw), 1)
    is_sig = (col >= 3 * m) & (col < 5 * m)          # sigma_x, sigma_y -> exp
    is_rho = (col >= 5 * m) & (col < 6 * m)          # rho_xy           -> tanh
    is_q = (col >= 6 * m) & (col < 6 * m + 3)        # q logits         -> log_softmax

    def step(t, carry):
        h, c = carry

        # Serial critical path: only the recurrent matmul.
        gates = gx_ref[t] + jnp.dot(h, wh, preferred_element_type=jnp.float32)

        # PyTorch gate order (i, f, g, o); each slice is 128-lane aligned.
        i = jax.nn.sigmoid(gates[:, 0 * hp:1 * hp])
        f = jax.nn.sigmoid(gates[:, 1 * hp:2 * hp])
        g = jnp.tanh(gates[:, 2 * hp:3 * hp])
        o = jax.nn.sigmoid(gates[:, 3 * hp:4 * hp])

        c = f * c + i * g
        h = o * jnp.tanh(c)

        # Fused heads: one (B, Hp) x (Hp, HEADW) matmul while h is in vregs.
        hd = jnp.dot(h, whead, preferred_element_type=jnp.float32) + bhead

        # log-softmax over the 3 q columns via lane masks (no narrow slices).
        q_masked = jnp.where(is_q, hd, -jnp.inf)
        mx = jnp.max(q_masked, axis=-1, keepdims=True)
        esum = jnp.sum(jnp.where(is_q, jnp.exp(hd - mx), 0.0),
                       axis=-1, keepdims=True)
        lse = mx + jnp.log(esum)

        out = jnp.where(is_sig, jnp.exp(hd),
              jnp.where(is_rho, jnp.tanh(hd),
              jnp.where(is_q, hd - lse, hd)))

        heads_ref[t] = out
        return h, c

    h, c = jax.lax.fori_loop(0, T, step, (h0_ref[...], c0_ref[...]))
    h_fin_ref[...] = h
    c_fin_ref[...] = c


# ------------------------------- wrapper --------------------------------------


def _pad_gate_cols(w, hidden, hp):
    """(rows, 4*hidden) -> (rows, 4*hp), each gate block starts at k*hp."""
    rows = w.shape[0]
    out = jnp.zeros((rows, 4 * hp), jnp.float32)
    for k in range(4):
        out = out.at[:, k * hp:k * hp + hidden].set(
            w[:, k * hidden:(k + 1) * hidden])
    return out


def decoder_forward(x, z, params, *, hidden, n_dist, state=None):
    T, B, d_in = x.shape
    hp = _round_up(hidden, 128)
    nhead = 6 * n_dist + 3
    headw = _round_up(nhead, 128)

    # ---- XLA pre-pass (off the serial critical path) --------------------------
    wi_pad = _pad_gate_cols(params["wi_t"], hidden, hp)          # (d_in, 4*hp)
    b_pad = _pad_gate_cols(params["b_lstm"], hidden, hp)         # (1, 4*hp)
    wh_pad = jnp.zeros((hp, 4 * hp), jnp.float32).at[:hidden].set(
        _pad_gate_cols(params["wh_t"], hidden, hp))              # (hp, 4*hp)

    whead = jnp.concatenate([params["wm_t"], params["wq_t"]], axis=1)
    bhead = jnp.concatenate([params["bm"], params["bq"]], axis=1)
    whead_pad = jnp.zeros((hp, headw), jnp.float32).at[:hidden, :nhead].set(whead)
    bhead_pad = jnp.zeros((1, headw), jnp.float32).at[:, :nhead].set(bhead)

    # Hoisted input projection: one (T*B, d_in) x (d_in, 4*hp) matmul.
    gx = (x.reshape(T * B, d_in) @ wi_pad + b_pad).reshape(T, B, 4 * hp)

    # init_state (state is None branch) computed in plain XLA.
    if state is None:
        hc = jnp.tanh(z @ params["wz_t"] + params["bz"])
        h0, c0 = hc[:, :hidden], hc[:, hidden:]
    else:
        h0, c0 = state[0][0], state[1][0]
    h0p = jnp.zeros((B, hp), jnp.float32).at[:, :hidden].set(h0)
    c0p = jnp.zeros((B, hp), jnp.float32).at[:, :hidden].set(c0)

    # ---- single grid-free fused kernel: everything VMEM-resident --------------
    heads_out, h_fin, c_fin = pl.pallas_call(
        functools.partial(decoder_kernel, n_dist=n_dist),
        out_shape=(jax.ShapeDtypeStruct((T, B, headw), jnp.float32),
                   jax.ShapeDtypeStruct((B, hp), jnp.float32),
                   jax.ShapeDtypeStruct((B, hp), jnp.float32)),
    )(gx, h0p, c0p, wh_pad, whead_pad, bhead_pad)

    # ---- strip padding / unpack ------------------------------------------------
    m = n_dist
    parts = [heads_out[..., i * m:(i + 1) * m] for i in range(6)]
    dist = dict(pi_logits=parts[0], mu_x=parts[1], mu_y=parts[2],
                sigma_x=parts[3], sigma_y=parts[4], rho_xy=parts[5])
    q_logits = heads_out[..., 6 * m:6 * m + 3]
    state_out = (h_fin[:, :hidden][None], c_fin[:, :hidden][None])
    return dist, q_logits, state_out


# ------------------------- pure-JAX reference ---------------------------------


def decoder_reference(x, z, params, *, hidden, n_dist):
    hc = jnp.tanh(z @ params["wz_t"] + params["bz"])
    h, c = hc[:, :hidden], hc[:, hidden:]

    def step(carry, x_t):
        h, c = carry
        gates = x_t @ params["wi_t"] + h @ params["wh_t"] + params["b_lstm"]
        i = jax.nn.sigmoid(gates[:, 0 * hidden:1 * hidden])
        f = jax.nn.sigmoid(gates[:, 1 * hidden:2 * hidden])
        g = jnp.tanh(gates[:, 2 * hidden:3 * hidden])
        o = jax.nn.sigmoid(gates[:, 3 * hidden:4 * hidden])
        c = f * c + i * g
        h = o * jnp.tanh(c)
        return (h, c), h

    (h, c), outs = jax.lax.scan(step, (h, c), x)
    mix = outs @ params["wm_t"] + params["bm"]
    q = outs @ params["wq_t"] + params["bq"]
    q = jax.nn.log_softmax(q, axis=-1)
    parts = [mix[..., i * n_dist:(i + 1) * n_dist] for i in range(6)]
    dist = dict(pi_logits=parts[0], mu_x=parts[1], mu_y=parts[2],
                sigma_x=jnp.exp(parts[3]), sigma_y=jnp.exp(parts[4]),
                rho_xy=jnp.tanh(parts[5]))
    return dist, q, (h[None], c[None])


# --------------------------------- main ----------------------------------------


if __name__ == "__main__":
    d_z, hidden, n_dist = 8, 32, 4
    T, B = 8, 2
    d_in = d_z + 5

    key = jax.random.PRNGKey(0)
    ks = jax.random.split(key, 12)
    s = 0.1
    params = {
        # LSTM: stored pre-transposed, gate order (i, f, g, o)
        "wi_t": s * jax.random.normal(ks[0], (d_in, 4 * hidden), jnp.float32),
        "wh_t": s * jax.random.normal(ks[1], (hidden, 4 * hidden), jnp.float32),
        "b_lstm": s * jax.random.normal(ks[2], (1, 4 * hidden), jnp.float32),
        # init_state: Linear(d_z, 2H)
        "wz_t": s * jax.random.normal(ks[3], (d_z, 2 * hidden), jnp.float32),
        "bz": s * jax.random.normal(ks[4], (1, 2 * hidden), jnp.float32),
        # mixture: Linear(H, 6M)
        "wm_t": s * jax.random.normal(ks[5], (hidden, 6 * n_dist), jnp.float32),
        "bm": s * jax.random.normal(ks[6], (1, 6 * n_dist), jnp.float32),
        # q_head: Linear(H, 3)
        "wq_t": s * jax.random.normal(ks[7], (hidden, 3), jnp.float32),
        "bq": s * jax.random.normal(ks[8], (1, 3), jnp.float32),
    }

    x = jax.random.normal(ks[9], (T, B, d_in), jnp.float32)
    z = jax.random.normal(ks[10], (B, d_z), jnp.float32)

    fwd = jax.jit(functools.partial(decoder_forward, hidden=hidden,
                                    n_dist=n_dist))
    dist, q_logits, state = fwd(x, z, params)
    jax.block_until_ready((dist, q_logits, state))

    # sanity check against the pure-JAX reference
    r_dist, r_q, r_state = decoder_reference(x, z, params,
                                             hidden=hidden, n_dist=n_dist)
    for k in dist:
        assert jnp.allclose(dist[k], r_dist[k], atol=1e-4, rtol=1e-4), k
    assert jnp.allclose(q_logits, r_q, atol=1e-4, rtol=1e-4)
    assert jnp.allclose(state[0], r_state[0], atol=1e-4, rtol=1e-4)
    assert jnp.allclose(state[1], r_state[1], atol=1e-4, rtol=1e-4)

    print("KERNEL_OK")
</pallas_src>

<mosaic_0001>
module attributes {stable_mosaic.version = 11 : i64} {
  func.func @decoder_kernel(%arg0: memref<8x2x512xf32, #tpu.memory_space<vmem>>, %arg1: memref<2x128xf32, #tpu.memory_space<vmem>>, %arg2: memref<2x128xf32, #tpu.memory_space<vmem>>, %arg3: memref<128x512xf32, #tpu.memory_space<vmem>>, %arg4: memref<128x128xf32, #tpu.memory_space<vmem>>, %arg5: memref<1x128xf32, #tpu.memory_space<vmem>>, %arg6: memref<8x2x128xf32, #tpu.memory_space<vmem>>, %arg7: memref<2x128xf32, #tpu.memory_space<vmem>>, %arg8: memref<2x128xf32, #tpu.memory_space<vmem>>) attributes {dimension_semantics = [], scalar_prefetch = 0 : i64, scratch_operands = 0 : i64, tpu.core_type = #tpu.core_type<tc>} {
    %c0 = arith.constant 0 : index
    %c0_0 = arith.constant 0 : index
    %0 = vector.load %arg3[%c0, %c0_0] : memref<128x512xf32, #tpu.memory_space<vmem>>, vector<128x512xf32>
    %c0_1 = arith.constant 0 : index
    %c0_2 = arith.constant 0 : index
    %1 = vector.load %arg4[%c0_1, %c0_2] : memref<128x128xf32, #tpu.memory_space<vmem>>, vector<128x128xf32>
    %c0_3 = arith.constant 0 : index
    %c0_4 = arith.constant 0 : index
    %2 = vector.load %arg5[%c0_3, %c0_4] : memref<1x128xf32, #tpu.memory_space<vmem>>, vector<1x128xf32>
    %3 = tpu.iota {dimensions = array<i32: 1>} : vector<2x128xi32>
    %c12_i32 = arith.constant 12 : i32
    %4 = vector.broadcast %c12_i32 : i32 to vector<2x128xi32>
    %5 = arith.cmpi sge, %3, %4 : vector<2x128xi32>
    %c20_i32 = arith.constant 20 : i32
    %6 = vector.broadcast %c20_i32 : i32 to vector<2x128xi32>
    %7 = arith.cmpi slt, %3, %6 : vector<2x128xi32>
    %8 = arith.andi %5, %7 : vector<2x128xi1>
    %c20_i32_5 = arith.constant 20 : i32
    %9 = vector.broadcast %c20_i32_5 : i32 to vector<2x128xi32>
    %10 = arith.cmpi sge, %3, %9 : vector<2x128xi32>
    %c24_i32 = arith.constant 24 : i32
    %11 = vector.broadcast %c24_i32 : i32 to vector<2x128xi32>
    %12 = arith.cmpi slt, %3, %11 : vector<2x128xi32>
    %13 = arith.andi %10, %12 : vector<2x128xi1>
    %c24_i32_6 = arith.constant 24 : i32
    %14 = vector.broadcast %c24_i32_6 : i32 to vector<2x128xi32>
    %15 = arith.cmpi sge, %3, %14 : vector<2x128xi32>
    %c27_i32 = arith.constant 27 : i32
    %16 = vector.broadcast %c27_i32 : i32 to vector<2x128xi32>
    %17 = arith.cmpi slt, %3, %16 : vector<2x128xi32>
    %18 = arith.andi %15, %17 : vector<2x128xi1>
    %c0_7 = arith.constant 0 : index
    %c0_8 = arith.constant 0 : index
    %19 = vector.load %arg1[%c0_7, %c0_8] : memref<2x128xf32, #tpu.memory_space<vmem>>, vector<2x128xf32>
    %c0_9 = arith.constant 0 : index
    %c0_10 = arith.constant 0 : index
    %20 = vector.load %arg2[%c0_9, %c0_10] : memref<2x128xf32, #tpu.memory_space<vmem>>, vector<2x128xf32>
    %c0_i32 = arith.constant 0 : i32
    %c8_i32 = arith.constant 8 : i32
    %21 = arith.addi %c0_i32, %c8_i32 : i32
    %c1_i32 = arith.constant 1 : i32
    %22:2 = scf.for %arg9 = %c0_i32 to %21 step %c1_i32 iter_args(%arg10 = %19, %arg11 = %20) -> (vector<2x128xf32>, vector<2x128xf32>)  : i32 {
      %25 = arith.index_cast %arg9 : i32 to index
      %c0_16 = arith.constant 0 : index
      %c0_17 = arith.constant 0 : index
      %26 = vector.load %arg0[%25, %c0_16, %c0_17] : memref<8x2x512xf32, #tpu.memory_space<vmem>>, vector<1x2x512xf32>
      %27 = vector.shape_cast %26 : vector<1x2x512xf32> to vector<2x512xf32>
      %cst = arith.constant dense<0.000000e+00> : vector<2x512xf32>
      %28 = tpu.matmul %arg10, %0, %cst {dimension_numbers = #tpu.dot_dimension_numbers<[1], [0], [0], [1], [0, 0, 1, 1], [], []>} : vector<2x128xf32>, vector<128x512xf32>, vector<2x512xf32> -> vector<2x512xf32>
      %29 = arith.addf %27, %28 : vector<2x512xf32>
      %30 = vector.extract_strided_slice %29 {offsets = [0, 0], sizes = [2, 128], strides = [1, 1]} : vector<2x512xf32> to vector<2x128xf32>
      %31 = arith.negf %30 : vector<2x128xf32>
      %32 = math.exp %31 : vector<2x128xf32>
      %cst_18 = arith.constant 1.000000e+00 : f32
      %33 = vector.broadcast %cst_18 : f32 to vector<2x128xf32>
      %34 = arith.addf %33, %32 : vector<2x128xf32>
      %35 = arith.divf %33, %34 : vector<2x128xf32>
      %36 = vector.extract_strided_slice %29 {offsets = [0, 128], sizes = [2, 128], strides = [1, 1]} : vector<2x512xf32> to vector<2x128xf32>
      %37 = arith.negf %36 : vector<2x128xf32>
      %38 = math.exp %37 : vector<2x128xf32>
      %cst_19 = arith.constant 1.000000e+00 : f32
      %39 = vector.broadcast %cst_19 : f32 to vector<2x128xf32>
      %40 = arith.addf %39, %38 : vector<2x128xf32>
      %41 = arith.divf %39, %40 : vector<2x128xf32>
      %42 = vector.extract_strided_slice %29 {offsets = [0, 256], sizes = [2, 128], strides = [1, 1]} : vector<2x512xf32> to vector<2x128xf32>
      %43 = math.tanh %42 : vector<2x128xf32>
      %44 = vector.extract_strided_slice %29 {offsets = [0, 384], sizes = [2, 128], strides = [1, 1]} : vector<2x512xf32> to vector<2x128xf32>
      %45 = arith.negf %44 : vector<2x128xf32>
      %46 = math.exp %45 : vector<2x128xf32>
      %cst_20 = arith.constant 1.000000e+00 : f32
      %47 = vector.broadcast %cst_20 : f32 to vector<2x128xf32>
      %48 = arith.addf %47, %46 : vector<2x128xf32>
      %49 = arith.divf %47, %48 : vector<2x128xf32>
      %50 = arith.mulf %41, %arg11 : vector<2x128xf32>
      %51 = arith.mulf %35, %43 : vector<2x128xf32>
      %52 = arith.addf %50, %51 : vector<2x128xf32>
      %53 = math.tanh %52 : vector<2x128xf32>
      %54 = arith.mulf %49, %53 : vector<2x128xf32>
      %cst_21 = arith.constant dense<0.000000e+00> : vector<2x128xf32>
      %55 = tpu.matmul %54, %1, %cst_21 {dimension_numbers = #tpu.dot_dimension_numbers<[1], [0], [0], [1], [0, 0, 1, 1], [], []>} : vector<2x128xf32>, vector<128x128xf32>, vector<2x128xf32> -> vector<2x128xf32>
      %56 = vector.broadcast %2 : vector<1x128xf32> to vector<2x128xf32>
      %57 = arith.addf %55, %56 : vector<2x128xf32>
      %cst_22 = arith.constant 0xFF800000 : f32
      %58 = vector.broadcast %cst_22 : f32 to vector<2x128xf32>
      %59 = arith.select %18, %57, %58 : vector<2x128xi1>, vector<2x128xf32>
      %cst_23 = arith.constant dense<0xFF800000> : vector<2xf32>
      %60 = vector.multi_reduction <maximumf>, %59, %cst_23 [1] : vector<2x128xf32> to vector<2xf32>
      %61 = vector.shape_cast %60 : vector<2xf32> to vector<2x1xf32>
      %62 = vector.broadcast %61 : vector<2x1xf32> to vector<2x128xf32>
      %63 = arith.subf %57, %62 : vector<2x128xf32>
      %64 = math.exp %63 : vector<2x128xf32>
      %cst_24 = arith.constant 0.000000e+00 : f32
      %65 = vector.broadcast %cst_24 : f32 to vector<2x128xf32>
      %66 = arith.select %18, %64, %65 : vector<2x128xi1>, vector<2x128xf32>
      %cst_25 = arith.constant dense<0.000000e+00> : vector<2xf32>
      %67 = vector.multi_reduction <add>, %66, %cst_25 [1] : vector<2x128xf32> to vector<2xf32>
      %68 = vector.shape_cast %67 : vector<2xf32> to vector<2x1xf32>
      %69 = math.log %68 : vector<2x1xf32>
      %70 = arith.addf %61, %69 : vector<2x1xf32>
      %71 = math.exp %57 : vector<2x128xf32>
      %72 = math.tanh %57 : vector<2x128xf32>
      %73 = vector.broadcast %70 : vector<2x1xf32> to vector<2x128xf32>
      %74 = arith.subf %57, %73 : vector<2x128xf32>
      %75 = arith.select %18, %74, %57 : vector<2x128xi1>, vector<2x128xf32>
      %76 = arith.select %13, %72, %75 : vector<2x128xi1>, vector<2x128xf32>
      %77 = arith.select %8, %71, %76 : vector<2x128xi1>, vector<2x128xf32>
      %78 = arith.index_cast %arg9 : i32 to index
      %c0_26 = arith.constant 0 : index
      %c0_27 = arith.constant 0 : index
      %79 = vector.load %arg6[%78, %c0_26, %c0_27] : memref<8x2x128xf32, #tpu.memory_space<vmem>>, vector<1x2x128xf32>
      %80 = vector.shape_cast %79 : vector<1x2x128xf32> to vector<2x128xf32>
      %81 = vector.shape_cast %77 : vector<2x128xf32> to vector<1x2x128xf32>
      tpu.vector_store %arg6[%78, %c0_26, %c0_27], %81 {strides = array<i32>} : memref<8x2x128xf32, #tpu.memory_space<vmem>>, vector<1x2x128xf32>,
      scf.yield %54, %52 : vector<2x128xf32>, vector<2x128xf32>
    }
    %c8_i32_11 = arith.constant 8 : i32
    %c0_12 = arith.constant 0 : index
    %c0_13 = arith.constant 0 : index
    %23 = vector.load %arg7[%c0_12, %c0_13] : memref<2x128xf32, #tpu.memory_space<vmem>>, vector<2x128xf32>
    tpu.vector_store %arg7[%c0_12, %c0_13], %22#0 {strides = array<i32>} : memref<2x128xf32, #tpu.memory_space<vmem>>, vector<2x128xf32>,
    %c0_14 = arith.constant 0 : index
    %c0_15 = arith.constant 0 : index
    %24 = vector.load %arg8[%c0_14, %c0_15] : memref<2x128xf32, #tpu.memory_space<vmem>>, vector<2x128xf32>
    tpu.vector_store %arg8[%c0_14, %c0_15], %22#1 {strides = array<i32>} : memref<2x128xf32, #tpu.memory_space<vmem>>, vector<2x128xf32>,
    return
  }
}

</mosaic_0001>

<bundles_post_ra>
// kernel: decoder_forward.1
= control target key start
LH: loop header
LB: loop body
LE: loop exit
PB: predicated region body
PF: predicated region fallthrough
CT: control target
= control target key end

     0   :  { %v1205_v51 = vlaneseq  ;;  %s1196_s0 = inlined_call_operand.vmem [shape: f32[8,2,512], index: 0, kind: input, shape index: {}]   ;;  %s1197_s3 = inlined_call_operand.vmem [shape: f32[128,512], index: 3, kind: input, shape index: {}]   ;;  %s1198_s6 = inlined_call_operand.vmem [shape: f32[8,2,128], index: 6, kind: output, shape index: {0}]   ;;  %s1199_s7 = inlined_call_operand.vmem [shape: f32[2,128], index: 7, kind: output, shape index: {1}]   ;;  %s1200_s8 = inlined_call_operand.vmem [shape: f32[2,128], index: 8, kind: output, shape index: {2}]   ;;  %s1201_s4 = inlined_call_operand.vmem [shape: f32[128,128], index: 4, kind: input, shape index: {}]   ;;  %s1202_s5 = inlined_call_operand.vmem [shape: f32[1,128], index: 5, kind: input, shape index: {}]   ;;  %s1203_s1 = inlined_call_operand.vmem [shape: f32[2,128], index: 1, kind: input, shape index: {}]   ;;  %s1204_s2 = inlined_call_operand.vmem [shape: f32[2,128], index: 2, kind: input, shape index: {}]  }
   0x1   :  { %v644_v0 = vld [vmem:[%s1197_s3] sm:$0xff]  ;;  %v649_v1 = vld [vmem:[%s1197_s3 + $0x8] sm:$0xff]  ;;  %v654_v2 = vld [vmem:[%s1197_s3 + $0x10] sm:$0xff] }
   0x2   :  { %1206 = vst [vmem:[#allocation2_spill] sm:$0xff] %v644_v0  ;;  %1207 = vst [vmem:[#allocation3_spill] sm:$0xff] %v649_v1  ;;  %v659_v3 = vld [vmem:[%s1197_s3 + $0x18] sm:$0xff]  ;;  %v664_v4 = vld [vmem:[%s1197_s3 + $0x20] sm:$0xff] }
   0x3   :  { %1208 = vst [vmem:[#allocation4_spill] sm:$0xff] %v654_v2  ;;  %1209 = vst [vmem:[#allocation5_spill] sm:$0xff] %v659_v3  ;;  %v669_v5 = vld [vmem:[%s1197_s3 + $0x28] sm:$0xff]  ;;  %v674_v6 = vld [vmem:[%s1197_s3 + $0x30] sm:$0xff]  ;;  %v108_v2 = vand.u32 127, %v1205_v51 }
   0x4   :  { %1210 = vst [vmem:[#allocation6_spill] sm:$0xff] %v664_v4  ;;  %1211 = vst [vmem:[#allocation7_spill] sm:$0xff] %v669_v5  ;;  %v679_v7 = vld [vmem:[%s1197_s3 + $0x38] sm:$0xff]  ;;  %v684_v8 = vld [vmem:[%s1197_s3 + $0x40] sm:$0xff] }
   0x5   :  { %1212 = vst [vmem:[#allocation8_spill] sm:$0xff] %v674_v6  ;;  %1213 = vst [vmem:[#allocation9_spill] sm:$0xff] %v679_v7  ;;  %v689_v9 = vld [vmem:[%s1197_s3 + $0x48] sm:$0xff]  ;;  %v694_v10 = vld [vmem:[%s1197_s3 + $0x50] sm:$0xff]  ;;  %vm109_vm0 = vcmp.ge.s32.totalorder %v108_v2, 12  ;;  %vm110_vm1 = vcmp.lt.s32.totalorder %v108_v2, 20 }
   0x6   :  { %1214 = vst [vmem:[#allocation10_spill] sm:$0xff] %v684_v8  ;;  %1215 = vst [vmem:[#allocation11_spill] sm:$0xff] %v689_v9  ;;  %v699_v11 = vld [vmem:[%s1197_s3 + $0x58] sm:$0xff]  ;;  %v704_v12 = vld [vmem:[%s1197_s3 + $0x60] sm:$0xff]  ;;  %vm112_vm2 = vcmp.ge.s32.totalorder %v108_v2, 20  ;;  %vm113_vm3 = vcmp.lt.s32.totalorder %v108_v2, 24 }
   0x7   :  { %1216 = vst [vmem:[#allocation12_spill] sm:$0xff] %v694_v10  ;;  %1217 = vst [vmem:[#allocation13_spill] sm:$0xff] %v699_v11  ;;  %v709_v13 = vld [vmem:[%s1197_s3 + $0x68] sm:$0xff]  ;;  %v714_v14 = vld [vmem:[%s1197_s3 + $0x70] sm:$0xff]  ;;  %vm115_vm4 = vcmp.ge.s32.totalorder %v108_v2, 24  ;;  %vm116_vm5 = vcmp.lt.s32.totalorder %v108_v2, 27 }
   0x8   :  { %1218 = vst [vmem:[#allocation14_spill] sm:$0xff] %v704_v12  ;;  %1219 = vst [vmem:[#allocation15_spill] sm:$0xff] %v709_v13  ;;  %v719_v15 = vld [vmem:[%s1197_s3 + $0x78] sm:$0xff]  ;;  %v724_v16 = vld [vmem:[%s1197_s3 + $0x80] sm:$0xff] }
   0x9   :  { %1220 = vst [vmem:[#allocation16_spill] sm:$0xff] %v714_v14  ;;  %1221 = vst [vmem:[#allocation17_spill] sm:$0xff] %v719_v15  ;;  %v729_v17 = vld [vmem:[%s1197_s3 + $0x88] sm:$0xff]  ;;  %v734_v18 = vld [vmem:[%s1197_s3 + $0x90] sm:$0xff] }
   0xa   :  { %1222 = vst [vmem:[#allocation18_spill] sm:$0xff] %v724_v16  ;;  %1223 = vst [vmem:[#allocation19_spill] sm:$0xff] %v729_v17  ;;  %v739_v19 = vld [vmem:[%s1197_s3 + $0x98] sm:$0xff]  ;;  %v744_v20 = vld [vmem:[%s1197_s3 + $0xa0] sm:$0xff] }
   0xb   :  { %1224 = vst [vmem:[#allocation20_spill] sm:$0xff] %v734_v18  ;;  %1225 = vst [vmem:[#allocation21_spill] sm:$0xff] %v739_v19  ;;  %v749_v21 = vld [vmem:[%s1197_s3 + $0xa8] sm:$0xff]  ;;  %v754_v22 = vld [vmem:[%s1197_s3 + $0xb0] sm:$0xff] }
   0xc   :  { %1226 = vst [vmem:[#allocation22_spill] sm:$0xff] %v744_v20  ;;  %1227 = vst [vmem:[#allocation23_spill] sm:$0xff] %v749_v21  ;;  %v759_v23 = vld [vmem:[%s1197_s3 + $0xb8] sm:$0xff]  ;;  %v764_v24 = vld [vmem:[%s1197_s3 + $0xc0] sm:$0xff] }
   0xd   :  { %1228 = vst [vmem:[#allocation24_spill] sm:$0xff] %v754_v22  ;;  %v769_v25 = vld [vmem:[%s1197_s3 + $0xc8] sm:$0xff]  ;;  %v774_v26 = vld [vmem:[%s1197_s3 + $0xd0] sm:$0xff]  ;;  %v779_v27 = vld [vmem:[%s1197_s3 + $0xd8] sm:$0xff] }
   0xe   :  { %v784_v28 = vld [vmem:[%s1197_s3 + $0xe0] sm:$0xff]  ;;  %v789_v29 = vld [vmem:[%s1197_s3 + $0xe8] sm:$0xff]  ;;  %v794_v30 = vld [vmem:[%s1197_s3 + $0xf0] sm:$0xff] }
   0xf   :  { %v799_v31 = vld [vmem:[%s1197_s3 + $0xf8] sm:$0xff]  ;;  %v804_v32 = vld [vmem:[%s1197_s3 + $0x100] sm:$0xff]  ;;  %v809_v33 = vld [vmem:[%s1197_s3 + $0x108] sm:$0xff] }
  0x10   :  { %v814_v34 = vld [vmem:[%s1197_s3 + $0x110] sm:$0xff]  ;;  %v819_v35 = vld [vmem:[%s1197_s3 + $0x118] sm:$0xff]  ;;  %v824_v36 = vld [vmem:[%s1197_s3 + $0x120] sm:$0xff] }
  0x11   :  { %v829_v37 = vld [vmem:[%s1197_s3 + $0x128] sm:$0xff]  ;;  %v834_v38 = vld [vmem:[%s1197_s3 + $0x130] sm:$0xff]  ;;  %v839_v39 = vld [vmem:[%s1197_s3 + $0x138] sm:$0xff] }
  0x12   :  { %v844_v40 = vld [vmem:[%s1197_s3 + $0x140] sm:$0xff]  ;;  %v849_v41 = vld [vmem:[%s1197_s3 + $0x148] sm:$0xff]  ;;  %v854_v42 = vld [vmem:[%s1197_s3 + $0x150] sm:$0xff] }
  0x13   :  { %v859_v43 = vld [vmem:[%s1197_s3 + $0x158] sm:$0xff]  ;;  %v864_v44 = vld [vmem:[%s1197_s3 + $0x160] sm:$0xff]  ;;  %v869_v45 = vld [vmem:[%s1197_s3 + $0x168] sm:$0xff] }
  0x14   :  { %v874_v46 = vld [vmem:[%s1197_s3 + $0x170] sm:$0xff]  ;;  %v879_v47 = vld [vmem:[%s1197_s3 + $0x178] sm:$0xff]  ;;  %v884_v48 = vld [vmem:[%s1197_s3 + $0x180] sm:$0xff] }
  0x15   :  { %v889_v49 = vld [vmem:[%s1197_s3 + $0x188] sm:$0xff]  ;;  %v894_v50 = vld [vmem:[%s1197_s3 + $0x190] sm:$0xff]  ;;  %v899_v52 = vld [vmem:[%s1197_s3 + $0x198] sm:$0xff] }
  0x16   :  { %v904_v53 = vld [vmem:[%s1197_s3 + $0x1a0] sm:$0xff]  ;;  %v909_v54 = vld [vmem:[%s1197_s3 + $0x1a8] sm:$0xff]  ;;  %v914_v55 = vld [vmem:[%s1197_s3 + $0x1b0] sm:$0xff] }
  0x17   :  { %v919_v56 = vld [vmem:[%s1197_s3 + $0x1b8] sm:$0xff]  ;;  %v924_v57 = vld [vmem:[%s1197_s3 + $0x1c0] sm:$0xff]  ;;  %v929_v58 = vld [vmem:[%s1197_s3 + $0x1c8] sm:$0xff] }
  0x18   :  { %v934_v59 = vld [vmem:[%s1197_s3 + $0x1d0] sm:$0xff]  ;;  %v939_v60 = vld [vmem:[%s1197_s3 + $0x1d8] sm:$0xff]  ;;  %v944_v61 = vld [vmem:[%s1197_s3 + $0x1e0] sm:$0xff] }
  0x19   :  { %v949_v62 = vld [vmem:[%s1197_s3 + $0x1e8] sm:$0xff]  ;;  %v954_v63 = vld [vmem:[%s1197_s3 + $0x1f0] sm:$0xff]  ;;  %v960_v0 = vld [vmem:[%s1197_s3 + $0x1f8] sm:$0xff] }
  0x1a   :  { %1229 = vst [vmem:[#allocation25_spill] sm:$0xff] %v960_v0  ;;  %v965_v3 = vld [vmem:[%s1201_s4] sm:$0xff]  ;;  %v970_v1 = vld [vmem:[%s1201_s4 + $0x8] sm:$0xff]  ;;  %v975_v6 = vld [vmem:[%s1201_s4 + $0x10] sm:$0xff] }
  0x1b   :  { %1230 = vst [vmem:[#allocation26_spill] sm:$0xff] %v965_v3  ;;  %1231 = vst [vmem:[#allocation27_spill] sm:$0xff] %v970_v1  ;;  %v980_v51 = vld [vmem:[%s1201_s4 + $0x18] sm:$0xff]  ;;  %v985_v4 = vld [vmem:[%s1201_s4 + $0x20] sm:$0xff] }
  0x1c   :  { %1232 = vst [vmem:[#allocation28_spill] sm:$0xff] %v975_v6  ;;  %1233 = vst [vmem:[#allocation29_spill] sm:$0xff] %v980_v51  ;;  %v990_v3 = vld [vmem:[%s1201_s4 + $0x28] sm:$0xff]  ;;  %v995_v1 = vld [vmem:[%s1201_s4 + $0x30] sm:$0xff] }
  0x1d   :  { %1234 = vst [vmem:[#allocation30_spill] sm:$0xff] %v985_v4  ;;  %1235 = vst [vmem:[#allocation31_spill] sm:$0xff] %v990_v3  ;;  %v1000_v6 = vld [vmem:[%s1201_s4 + $0x38] sm:$0xff]  ;;  %v1005_v51 = vld [vmem:[%s1201_s4 + $0x40] sm:$0xff] }
  0x1e   :  { %1236 = vst [vmem:[#allocation32_spill] sm:$0xff] %v995_v1  ;;  %1237 = vst [vmem:[#allocation33_spill] sm:$0xff] %v1000_v6  ;;  %v1010_v4 = vld [vmem:[%s1201_s4 + $0x48] sm:$0xff]  ;;  %v1015_v3 = vld [vmem:[%s1201_s4 + $0x50] sm:$0xff] }
  0x1f   :  { %1238 = vst [vmem:[#allocation34_spill] sm:$0xff] %v1005_v51  ;;  %1239 = vst [vmem:[#allocation35_spill] sm:$0xff] %v1010_v4  ;;  %v1020_v1 = vld [vmem:[%s1201_s4 + $0x58] sm:$0xff]  ;;  %v1025_v6 = vld [vmem:[%s1201_s4 + $0x60] sm:$0xff] }
  0x20   :  { %1240 = vst [vmem:[#allocation36_spill] sm:$0xff] %v1015_v3  ;;  %1241 = vst [vmem:[#allocation37_spill] sm:$0xff] %v1020_v1  ;;  %v1030_v51 = vld [vmem:[%s1201_s4 + $0x68] sm:$0xff]  ;;  %v1035_v4 = vld [vmem:[%s1201_s4 + $0x70] sm:$0xff] }
  0x21   :  { %1242 = vst [vmem:[#allocation38_spill] sm:$0xff] %v1025_v6  ;;  %1243 = vst [vmem:[#allocation39_spill] sm:$0xff] %v1030_v51  ;;  %v1040_v3 = vld [vmem:[%s1201_s4 + $0x78] sm:$0xff]  ;;  %v1045_v1 = vld [vmem:[%s1202_s5] ss:$0 sm:$0xff]  ;;  %s1069_s4 = smov 0  }
  0x22   :  { %1244 = vst [vmem:[#allocation40_spill] sm:$0xff] %v1035_v4  ;;  %1245 = vst [vmem:[#allocation41_spill] sm:$0xff] %v1040_v3  ;;  %v118_v51 = vld [vmem:[%s1203_s1] sm:$0x3]  }
  0x23   :  { %1246 = vst [vmem:[#allocation42_spill] sm:$0xff] %v1045_v1  ;;  %vm1047_vm6 = vmand %vm109_vm0, %vm110_vm1  ;;  %v119_v4 = vld [vmem:[%s1204_s2] sm:$0x3]  }
  0x24   :  { %vm1057_vm7 = vmand %vm112_vm2, %vm113_vm3 }
  0x25   :  { %vm1061_vm8 = vmand %vm115_vm4, %vm116_vm5 }
  0x26 LB: > { %132 = vmatprep.subr.mxu0 %v949_v62  ;;  %v1253_v0 = vld [vmem:[#allocation25_spill] sm:$0xff]  ;;  %v1254_v21 = vld [vmem:[#allocation23_spill] sm:$0xff]  ;;  %v1255_v20 = vld [vmem:[#allocation22_spill] sm:$0xff]  ;;  %vm594_vm9 = vmmov 0   ;;  %s465_s1 = sshll.u32 %s591_s4, 3  ;;  %vm405_vm10 = vcmask 1041408   ;;  %s591_s4 = sphi %s1069_s4, %s125_s4   ;;  %v587_v51 = vphi %v118_v51, %v1296_v51   ;;  %v583_v4 = vphi %v119_v4, %v1295_v4  }
  0x27   : > { %203 = vmatprep.subr.mxu1 %v1253_v0  ;;  %133 = vmatpush1.msra.mxu0 %v944_v61  ;;  %v1256_v22 = vld [vmem:[#allocation24_spill] sm:$0xff]  ;;  %v1257_v17 = vld [vmem:[#allocation19_spill] sm:$0xff]  ;;  %v1258_v19 = vld [vmem:[#allocation21_spill] sm:$0xff]  ;;  %s130_s15 = scalar_lea.vmem %s1196_s0, %s465_s1  ;;  %s464_s16 = sshll.u32 %s591_s4, 1 }
  0x28   : > { %204 = vmatpush1.msra.mxu1 %v954_v63  ;;  %134 = vmatprep.subr.mxu0 %v929_v58  ;;  %v1259_v16 = vld [vmem:[#allocation18_spill] sm:$0xff]  ;;  %v1260_v18 = vld [vmem:[#allocation20_spill] sm:$0xff]  ;;  %v1261_v13 = vld [vmem:[#allocation15_spill] sm:$0xff]  ;;  %s427_s19 = scalar_lea.vmem %s1198_s6, %s464_s16  ;;  %s125_s4 = sadd.s32 1, %s591_s4  }
  0x29   : > { %205 = vmatprep.subr.mxu1 %v939_v60  ;;  %135 = vmatpush1.msra.mxu0 %v924_v57  ;;  %v1262_v15 = vld [vmem:[#allocation17_spill] sm:$0xff]  ;;  %v1263_v12 = vld [vmem:[#allocation14_spill] sm:$0xff]  ;;  %v1264_v14 = vld [vmem:[#allocation16_spill] sm:$0xff]  ;;  %p122_p0 = scmp.ge.s32.totalorder %s125_s4, 8  }
  0x2a   : > { %206 = vmatpush1.msra.mxu1 %v934_v59  ;;  %136 = vmatprep.subr.mxu0 %v909_v54  ;;  %v1265_v9 = vld [vmem:[#allocation11_spill] sm:$0xff]  ;;  %v1266_v11 = vld [vmem:[#allocation13_spill] sm:$0xff]  ;;  %v1267_v8 = vld [vmem:[#allocation10_spill] sm:$0xff] }
  0x2b   : > { %207 = vmatprep.subr.mxu1 %v919_v56  ;;  %137 = vmatpush1.msra.mxu0 %v904_v53  ;;  %v1268_v10 = vld [vmem:[#allocation12_spill] sm:$0xff]  ;;  %v1269_v5 = vld [vmem:[#allocation7_spill] sm:$0xff]  ;;  %v1270_v7 = vld [vmem:[#allocation9_spill] sm:$0xff] }
  0x2c   : > { %208 = vmatpush1.msra.mxu1 %v914_v55  ;;  %138 = vmatprep.subr.mxu0 %v889_v49  ;;  %v1271_v2 = vld [vmem:[#allocation6_spill] sm:$0xff]  ;;  %v1272_v0 = vld [vmem:[#allocation8_spill] sm:$0xff] }
  0x2d   : > { %209 = vmatprep.subr.mxu1 %v899_v52  ;;  %139 = vmatpush1.msra.mxu0 %v884_v48 }
  0x2e   : > { %210 = vmatpush1.msra.mxu1 %v894_v50  ;;  %140 = vmatprep.subr.mxu0 %v869_v45 }
  0x2f   : > { %211 = vmatprep.subr.mxu1 %v879_v47  ;;  %141 = vmatpush1.msra.mxu0 %v864_v44 }
  0x30   : > { %212 = vmatpush1.msra.mxu1 %v874_v46  ;;  %142 = vmatprep.subr.mxu0 %v849_v41 }
  0x31   : > { %213 = vmatprep.subr.mxu1 %v859_v43  ;;  %143 = vmatpush1.msra.mxu0 %v844_v40 }
  0x32   : > { %214 = vmatpush1.msra.mxu1 %v854_v42  ;;  %144 = vmatprep.subr.mxu0 %v829_v37 }
  0x33   : > { %215 = vmatprep.subr.mxu1 %v839_v39  ;;  %145 = vmatpush1.msra.mxu0 %v824_v36 }
  0x34   : > { %216 = vmatpush1.msra.mxu1 %v834_v38  ;;  %146 = vmatprep.subr.mxu0 %v809_v33 }
  0x35   : > { %217 = vmatprep.subr.mxu1 %v819_v35  ;;  %147 = vmatpush1.msra.mxu0 %v804_v32 }
  0x36   : > { %218 = vmatpush1.msra.mxu1 %v814_v34  ;;  %148 = vmatprep.subr.mxu0 %v789_v29 }
  0x37   : > { %219 = vmatprep.subr.mxu1 %v799_v31  ;;  %149 = vmatpush1.msra.mxu0 %v784_v28 }
  0x38   : > { %220 = vmatpush1.msra.mxu1 %v794_v30  ;;  %150 = vmatprep.subr.mxu0 %v769_v25 }
  0x39   : > { %221 = vmatprep.subr.mxu1 %v779_v27  ;;  %151 = vmatpush1.msra.mxu0 %v764_v24 }
  0x3a   : > { %222 = vmatpush1.msra.mxu1 %v774_v26  ;;  %152 = vmatprep.subr.mxu0 %v1254_v21 }
  0x3b   : > { %223 = vmatprep.subr.mxu1 %v759_v23  ;;  %153 = vmatpush1.msra.mxu0 %v1255_v20 }
  0x3c   : > { %224 = vmatpush1.msra.mxu1 %v1256_v22  ;;  %154 = vmatprep.subr.mxu0 %v1257_v17 }
  0x3d   : > { %225 = vmatprep.subr.mxu1 %v1258_v19  ;;  %155 = vmatpush1.msra.mxu0 %v1259_v16 }
  0x3e   : > { %226 = vmatpush1.msra.mxu1 %v1260_v18  ;;  %156 = vmatprep.subr.mxu0 %v1261_v13  ;;  %v1273_v13 = vld [vmem:[#allocation3_spill] sm:$0xff] }
  0x3f   : > { %227 = vmatprep.subr.mxu1 %v1262_v15  ;;  %157 = vmatpush1.msra.mxu0 %v1263_v12  ;;  %v1274_v12 = vld [vmem:[#allocation5_spill] sm:$0xff] }
  0x40   : > { %228 = vmatpush1.msra.mxu1 %v1264_v14  ;;  %158 = vmatprep.subr.mxu0 %v1265_v9  ;;  %v1275_v14 = vld [vmem:[#allocation2_spill] sm:$0xff]  ;;  %v593_v9 = vmov 0.0  }
  0x41   : > { %229 = vmatprep.subr.mxu1 %v1266_v11  ;;  %159 = vmatpush1.msra.mxu0 %v1267_v8  ;;  %v1276_v11 = vld [vmem:[#allocation4_spill] sm:$0xff] }
  0x42   : > { %230 = vmatpush1.msra.mxu1 %v1268_v10  ;;  %160 = vmatprep.subr.mxu0 %v1269_v5  ;;  %v1277_v5 = vld [vmem:[#allocation41_spill] sm:$0xff] }
  0x43   : > { %231 = vmatprep.subr.mxu1 %v1270_v7  ;;  %161 = vmatpush1.msra.mxu0 %v1271_v2  ;;  %v1285_v2 = vld [vmem:[#allocation33_spill] sm:$0xff]  ;;  %v1293_v7 = vlaneseq }
  0x44   : > { %232 = vmatpush1.msra.mxu1 %v1272_v0  ;;  %162 = vmatprep.subr.mxu0 %v1273_v13  ;;  %v1278_v0 = vld [vmem:[#allocation40_spill] sm:$0xff]  ;;  %v1279_v13 = vld [vmem:[#allocation39_spill] sm:$0xff] }
  0x45   : > { %233 = vmatprep.subr.mxu1 %v1274_v12  ;;  %163 = vmatpush1.msra.mxu0 %v1275_v14  ;;  %v1280_v12 = vld [vmem:[#allocation38_spill] sm:$0xff]  ;;  %v1281_v14 = vld [vmem:[#allocation37_spill] sm:$0xff] }
  0x46   : > { %196 = vmatprep.mubr.f32.mxu0 %v593_v9  ;;  %234 = vmatpush1.msra.mxu1 %v1276_v11  ;;  %v1282_v11 = vld [vmem:[#allocation36_spill] sm:$0xff] }
  0x47   : > { %267 = vmatprep.mubr.f32.mxu1 %v593_v9  ;;  %197 = vmatmul.mubr.f32.vlgmr.msra.gmra.mxu0 %v587_v51 }
  0x48   : > { %268 = vmatmul.mubr.f32.vlgmr.msra.gmra.mxu1 %v587_v51  ;;  %483 = vmatprep.subr.mxu0 %v593_v9  ;;  %v1283_v51 = vld [vmem:[#allocation35_spill] sm:$0xff] }
  0x49   : > { %484 = vmatpush3.msra.mxu0 %v1277_v5  ;;  %v1284_v5 = vld [vmem:[#allocation34_spill] sm:$0xff]  ;;  %515 = vmatprep.mubr.msk.f32.mxu0 %vm594_vm9, %v593_v9 }
  0x4a   : > { %485 = vmatprep.subr.mxu0 %v593_v9 }
  0x4b   : > { %486 = vmatpush3.msra.mxu0 %v1278_v0  ;;  %v1286_v0 = vld [vmem:[#allocation32_spill] sm:$0xff] }
  0x4c   : > { %487 = vmatprep.subr.mxu0 %v593_v9 }
  0x4d   : > { %488 = vmatpush3.msra.mxu0 %v1279_v13  ;;  %v1287_v13 = vld [vmem:[#allocation31_spill] sm:$0xff] }
  0x4e   : > { %489 = vmatprep.subr.mxu0 %v593_v9 }
  0x4f   : > { %490 = vmatpush3.msra.mxu0 %v1280_v12  ;;  %v1288_v12 = vld [vmem:[#allocation30_spill] sm:$0xff] }
  0x50   : > { %491 = vmatprep.subr.mxu0 %v593_v9 }
  0x51   : > { %492 = vmatpush3.msra.mxu0 %v1281_v14  ;;  %v1289_v14 = vld [vmem:[#allocation29_spill] sm:$0xff] }
  0x52   : > { %493 = vmatprep.subr.mxu0 %v593_v9 }
  0x53   : > { %494 = vmatpush3.msra.mxu0 %v1282_v11  ;;  %v1290_v11 = vld [vmem:[#allocation28_spill] sm:$0xff] }
  0x54   : > { %495 = vmatprep.subr.mxu0 %v593_v9 }
  0x55   : > { %496 = vmatpush3.msra.mxu0 %v1283_v51  ;;  %v1291_v51 = vld [vmem:[#allocation27_spill] sm:$0xff] }
  0x56   : > { %497 = vmatprep.subr.mxu0 %v593_v9 }
  0x57   : > { %498 = vmatpush3.msra.mxu0 %v1284_v5  ;;  %v1292_v5 = vld [vmem:[#allocation26_spill] sm:$0xff] }
  0x58   : > { %499 = vmatprep.subr.mxu0 %v593_v9 }
  0x59   : > { %500 = vmatpush3.msra.mxu0 %v1285_v2  ;;  %v595_v2 = vmov 1983009808  }
  0x5a   : > { %501 = vmatprep.subr.mxu0 %v593_v9 }
  0x5b   : > { %502 = vmatpush3.msra.mxu0 %v1286_v0  ;;  %v281_v0 = vunpack.c.l.s4 %v595_v2 }
  0x5c   : > { %503 = vmatprep.subr.mxu0 %v593_v9 }
  0x5d   : > { %504 = vmatpush3.msra.mxu0 %v1287_v13  ;;  %v282_v13 = vunpack.c.0.s8 %v281_v0 }
  0x5e   : > { %505 = vmatprep.subr.mxu0 %v593_v9 }
  0x5f   : > { %506 = vmatpush3.msra.mxu0 %v1288_v12  ;;  %v284_v12 = vshrl.u32 %v1293_v7, 7 }
  0x60   : > { %507 = vmatprep.subr.mxu0 %v593_v9 }
  0x61   : > { %508 = vmatpush3.msra.mxu0 %v1289_v14  ;;  %v285_v14 = vsub.s32 %v282_v13, %v284_v12 }
  0x62   : > { %509 = vmatprep.subr.mxu0 %v593_v9 }
  0x63   : > { %510 = vmatpush3.msra.mxu0 %v1290_v11 }
  0x64   : > { %511 = vmatprep.subr.mxu0 %v593_v9 }
  0x65   : > { %512 = vmatpush3.msra.mxu0 %v1291_v51 }
  0x66   : > { %513 = vmatprep.subr.mxu0 %v593_v9  ;;  %v131_v9 = vld [vmem:[%s130_s15] sm:$0xff] }
  0x67   : > { %514 = vmatpush3.msra.mxu0 %v1292_v5 }
 0x107   : > { %v198_v8 = vpop.f32.mrf.mxu0 }
 0x108   : > { %v269_v10 = vpop.f32.mrf.mxu1 }
 0x109   : > { %v200_v15 = vpop.f32.mrf.mxu0 }
 0x10a   : > { %v271_v16 = vpop.f32.mrf.mxu1  ;;  %v278_v11 = vcombine.low %v198_v8, %v200_v15 }
 0x10b   : > { %v279_v51 = vcombine.low %v269_v10, %v271_v16 }
 0x10c   : > { %v286_v5 = vrot.slane %v278_v11, %v285_v14 }
 0x10d   : > { %v293_v17 = vrot.slane %v279_v51, %v285_v14 }
 0x10f   : > { %v294_v18 = vcombine.low %v286_v5, %v293_v17 }
 0x111   : > { %v296_v2 = vadd.f32 %v294_v18, %v131_v9 }
 0x113   : > { %v460_v0 = vmul.f32 -1.442695, %v296_v2  ;;  %v304_v19 = vrot.slane %v296_v2, 2  ;;  %v315_v20 = vrot.slane %v296_v2, 6  ;;  %v312_v21 = vrot.slane %v296_v2, 4 }
 0x115   : > { %545 = vpow2.f32 %v460_v0  ;;  %v461_v7 = vmul.f32 -1.442695, %v304_v19  ;;  %v462_v13 = vmul.f32 -1.442695, %v315_v20  ;;  %v1294_v0 = vld [vmem:[#allocation42_spill] sm:$0xff] }
 0x117   : > { %547 = vpow2.f32 %v461_v7 }
 0x118   : > { %549 = vpow2.f32 %v462_v13 }
 0x122   : > { %v546_v12 = vpop.eup %545 }
 0x123   : > { %v300_v8 = vadd.f32 1.0, %v546_v12 }
 0x124   : > { %v548_v15 = vpop.eup %547 }
 0x125   : > { %551 = vrcp.f32 %v300_v8  ;;  %v309_v22 = vadd.f32 1.0, %v548_v15  ;;  %v550_v10 = vpop.eup %549 }
 0x126   : > { %553 = vtanh.f32 %v312_v21  ;;  %v320_v14 = vadd.f32 1.0, %v550_v10 }
 0x127   : > { %555 = vrcp.f32 %v309_v22 }
 0x128   : > { %557 = vrcp.f32 %v320_v14 }
 0x132   : > { %v552_v16 = vpop.eup %551 }
 0x133   : > { %v554_v17 = vpop.eup %553 }
 0x134   : > { %v556_v18 = vpop.eup %555  ;;  %v324_v19 = vmul.f32 %v554_v17, %v552_v16 }
 0x135   : > { %v323_v11 = vmul.f32 %v583_v4, %v556_v18  ;;  %v558_v20 = vpop.eup %557 }
 0x137   : > { %v325_v5 = vadd.f32 %v324_v19, %v323_v11  }
 0x139   : > { %559 = vtanh.f32 %v325_v5  ;;  %430 = vst [vmem:[%s1200_s8] sm:$0x3] (%p122_p0), %v325_v5 }
 0x146   : > { %v560_v51 = vpop.eup %559 }
 0x147   : > { %v327_v9 = vmul.f32 %v560_v51, %v558_v20  }
 0x149   : > { %516 = vmatmul.mubr.f32.vlgmr.msra.gmra.mxu0 %v327_v9  ;;  %429 = vst [vmem:[%s1199_s7] sm:$0x3] (%p122_p0), %v327_v9 }
 0x209   : > { %v400_v2 = vpop.f32.mrf.mxu0 }
 0x20a   : > { %v401_v7 = vadd.f32 %v1294_v0, %v400_v2 }
 0x20b   : > { %v517_v21 = vpop.f32.mrf.mxu0 }
 0x20c   : > { %v404_v22 = vsel %vm1061_vm8, %v401_v7, -inf  ;;  %v419_v18 = vmul.f32 1.442695, %v401_v7 }
 0x20d   : > { %v406_v13 = vsel %vm405_vm10, %v404_v22, -inf }
 0x20e   : > { %407 = vmax.xlane.f32.xlu0 %v406_v13 }
 0x297   : > { %v408_v12 = vpop.xlane.xlu0 %407 }
 0x298   : > { %v409_v4 = vsub.f32 %v401_v7, %v408_v12 }
 0x29a   : > { %v410_v8 = vmul.f32 1.442695, %v409_v4  ;;  %v1295_v4 = vmov %v325_v5 }
 0x29c   : > { %561 = vpow2.f32 %v410_v8 }
 0x2a9   : > { %v562_v15 = vpop.eup %561 }
 0x2aa   : > { %v412_v10 = vsel %vm1061_vm8, %v562_v15, 0.0 }
 0x2ab   : > { %v413_v16 = vsel %vm405_vm10, %v412_v10, 0.0 }
 0x2ac   : > { %414 = vadd.xlane.f32.xlu0 %v413_v16 }
 0x335   : > { %v415_v17 = vpop.xlane.xlu0 %414 }
 0x336   : > { %563 = vlog2.f32 %v415_v17 }
 0x337   : > { %565 = vtanh.f32 %v401_v7 }
 0x338   : > { %567 = vpow2.f32 %v419_v18 }
 0x343   : > { %v564_v14 = vpop.eup %563 }
 0x344   : > { %v417_v11 = vmul.f32 0.6931472, %v564_v14  ;;  %v566_v51 = vpop.eup %565 }
 0x345   : > { %v568_v0 = vpop.eup %567 }
 0x346   : > { %v418_v19 = vadd.f32 %v417_v11, %v408_v12 }
 0x348   : > { %v422_v20 = vsub.f32 %v401_v7, %v418_v19 }
 0x349   :  { %124 = sbr.rel (!%p122_p0) target bundleno = 38 (0x26), region = 69 }
 0x34a   : > { %v423_v2 = vsel %vm1061_vm8, %v422_v20, %v401_v7 }
 0x34b   : > { %v424_v21 = vsel %vm1057_vm7, %v566_v51, %v423_v2  ;;  %v1296_v51 = vmov %v327_v9 }
 0x34c   : > { %v425_v22 = vsel %vm1047_vm6, %v568_v0, %v424_v21 }
 0x34d   : > { %428 = vst [vmem:[%s427_s19] sm:$0x3] %v425_v22 }

</bundles_post_ra>
